<compile_context>
chip_gen: v6e
topology: v6e:2x2x1
jax: 0.10.0
libtpu: 0.0.40
codegen_flags: <defaults>
</compile_context>

<pallas_src>
import functools

import jax
import jax.numpy as jnp
from jax import lax
from jax.experimental import pallas as pl
from jax.experimental.pallas import tpu as pltpu

NEG_SLOPE = 0.01   # nn.LeakyReLU default
EPS = 1e-5         # nn.BatchNorm2d default


def _leaky(x):
    return jnp.where(x >= 0, x, NEG_SLOPE * x)


def ep_kernel(x_ref, w0d_ref, b0_ref, kdw_ref, bdw_ref, w1_ref, bf_ref, o_ref,
              *, H, W, Cout):
    """One image per grid step.

    x_ref  : (1, H, W*Cin)            lane-dense input
    w0d_ref: (W*Cin, 2*W*Cout)        block-diag [conv1x1_0*s0 | downsample*sd]
    b0_ref : (1, W*Cout)              bn0 bias (tiled over W)
    kdw_ref: (9, W*Cout)              depthwise taps * bn_dw scale (tiled over W)
    bdw_ref: (1, W*Cout)              bn_dw bias
    w1_ref : (W*Cout, W*Cout)         block-diag conv1x1_1*s1
    bf_ref : (1, W*Cout)              bn_d bias + bn1 bias (residual bias)
    o_ref  : (1, H, W*Cout)           lane-dense output
    """
    WC = W * Cout
    x = x_ref[0]                                                  # (H, W*Cin)

    # --- fused conv1x1_0 + downsample (one MXU matmul, BN scales pre-folded) ---
    t = jnp.dot(x, w0d_ref[...], preferred_element_type=jnp.float32)   # (H, 2*WC)
    out0 = _leaky(t[:, :WC] + b0_ref[...])                        # bn0 + leaky
    ident = t[:, WC:]                                             # bias folded into bf

    # --- depthwise 3x3, stride=1, pad=1, in dense (H, W*Cout) layout ---
    padded = jnp.pad(out0, ((1, 1), (Cout, Cout)))                # (H+2, (W+2)*Cout)
    kdw = kdw_ref[...]                                            # (9, WC)
    acc = jnp.broadcast_to(bdw_ref[...], (H, WC))                 # start from bn_dw bias
    for ky in range(3):
        for kx in range(3):
            slab = padded[ky:ky + H, kx * Cout:kx * Cout + WC]    # shifted (H, WC)
            acc = acc + slab * kdw[ky * 3 + kx]
    dw = _leaky(acc)

    # --- conv1x1_1 (block-diag matmul) + residual + final leaky ---
    out2 = jnp.dot(dw, w1_ref[...], preferred_element_type=jnp.float32)  # (H, WC)
    o_ref[0] = _leaky(ident + out2 + bf_ref[...]).astype(o_ref.dtype)


def ep_forward(x_nhwc, p):
    """x_nhwc: (N, H, W, Cin) float32. Returns (N, H, W, Cout)."""
    N, H, W, Cin = x_nhwc.shape
    Cout = p["cout"]
    WC = W * Cout
    x_wide = x_nhwc.reshape(N, H, W * Cin)            # lane-dense input

    kernel = functools.partial(ep_kernel, H=H, W=W, Cout=Cout)

    def const_spec(arr):
        shp = arr.shape
        return pl.BlockSpec(shp, lambda n: (0,) * len(shp))

    out = pl.pallas_call(
        kernel,
        out_shape=jax.ShapeDtypeStruct((N, H, WC), jnp.float32),
        grid=(N,),
        in_specs=[
            pl.BlockSpec((1, H, W * Cin), lambda n: (n, 0, 0)),
            const_spec(p["w0d"]),
            const_spec(p["b0w"]),
            const_spec(p["kdw"]),
            const_spec(p["bdww"]),
            const_spec(p["w1b"]),
            const_spec(p["bfw"]),
        ],
        out_specs=pl.BlockSpec((1, H, WC), lambda n: (n, 0, 0)),
        compiler_params=pltpu.CompilerParams(
            dimension_semantics=("parallel",)),
    )(x_wide, p["w0d"], p["b0w"], p["kdw"], p["bdww"], p["w1b"], p["bfw"])

    return out.reshape(N, H, W, Cout)


# ----------------------- parameter prep (plain JAX) -----------------------
def fold_bn(gamma, beta, mean, var):
    scale = gamma / jnp.sqrt(var + EPS)
    bias = beta - mean * scale
    return scale, bias


def pack_params(w0_oihw, wdw_oihw, w1_oihw, wd_oihw, bn0, bn_dw, bn1, bn_d, W):
    Cout = w0_oihw.shape[0]
    s0, b0 = fold_bn(*bn0)
    sdw, bdw = fold_bn(*bn_dw)
    s1, b1 = fold_bn(*bn1)
    sd, bd = fold_bn(*bn_d)

    # Fold BN scales straight into the conv weights.
    w0 = w0_oihw[:, :, 0, 0].T * s0[None, :]     # (Cin, Cout)
    wd = wd_oihw[:, :, 0, 0].T * sd[None, :]     # (Cin, Cout)
    w1 = w1_oihw[:, :, 0, 0].T * s1[None, :]     # (Cout, Cout)
    wdw = jnp.transpose(wdw_oihw[:, 0], (1, 2, 0)).reshape(9, Cout) * sdw[None, :]

    # Block-diagonal (over W) weights so the 1x1 convs run directly in the
    # lane-dense (H, W*C) layout; conv0 and downsample are fused side by side.
    eye_w = jnp.eye(W, dtype=jnp.float32)
    w0d = jnp.concatenate([jnp.kron(eye_w, w0), jnp.kron(eye_w, wd)], axis=1)
    w1b = jnp.kron(eye_w, w1)                    # (W*Cout, W*Cout)

    kdw = jnp.tile(wdw, (1, W))                  # (9, W*Cout)
    b0w = jnp.tile(b0, W)[None, :]               # (1, W*Cout)
    bdww = jnp.tile(bdw, W)[None, :]
    bfw = jnp.tile(bd + b1, W)[None, :]          # combined residual bias

    return dict(w0d=w0d, w1b=w1b, kdw=kdw, b0w=b0w, bdww=bdww, bfw=bfw,
                cout=int(Cout))


# ----------------------------- reference (XLA) -----------------------------
def ref_forward_nchw(x, rp, Cout):
    def bn(y, g, b, m, v):
        g, b, m, v = (a[None, :, None, None] for a in (g, b, m, v))
        return (y - m) / jnp.sqrt(v + EPS) * g + b

    def conv(y, w, groups=1, pad=0):
        return lax.conv_general_dilated(
            y, w, (1, 1), [(pad, pad), (pad, pad)],
            dimension_numbers=("NCHW", "OIHW", "NCHW"),
            feature_group_count=groups)

    out = _leaky(bn(conv(x, rp["w0_oihw"]), *rp["bn0"]))
    out = _leaky(bn(conv(out, rp["wdw_oihw"], groups=Cout, pad=1), *rp["bn_dw"]))
    out = bn(conv(out, rp["w1_oihw"]), *rp["bn1"])
    ident = bn(conv(x, rp["wd_oihw"]), *rp["bn_d"])
    return _leaky(ident + out)


def make_params(key, Cin, Cout, W):
    ks = jax.random.split(key, 16)

    def bn_params(k):
        k1, k2, k3, k4 = jax.random.split(k, 4)
        gamma = 1.0 + 0.1 * jax.random.normal(k1, (Cout,), jnp.float32)
        beta = 0.1 * jax.random.normal(k2, (Cout,), jnp.float32)
        mean = 0.1 * jax.random.normal(k3, (Cout,), jnp.float32)
        var = 1.0 + 0.1 * jax.random.uniform(k4, (Cout,), jnp.float32)
        return gamma, beta, mean, var

    w0_oihw = 0.2 * jax.random.normal(ks[0], (Cout, Cin, 1, 1), jnp.float32)
    wdw_oihw = 0.2 * jax.random.normal(ks[1], (Cout, 1, 3, 3), jnp.float32)
    w1_oihw = 0.2 * jax.random.normal(ks[2], (Cout, Cout, 1, 1), jnp.float32)
    wd_oihw = 0.2 * jax.random.normal(ks[3], (Cout, Cin, 1, 1), jnp.float32)
    bn0, bn_dw, bn1, bn_d = (bn_params(ks[4 + i]) for i in range(4))

    ref = dict(w0_oihw=w0_oihw, wdw_oihw=wdw_oihw, w1_oihw=w1_oihw,
               wd_oihw=wd_oihw, bn0=bn0, bn_dw=bn_dw, bn1=bn1, bn_d=bn_d)
    kernel = pack_params(w0_oihw, wdw_oihw, w1_oihw, wd_oihw,
                         bn0, bn_dw, bn1, bn_d, W)
    return kernel, ref


if __name__ == "__main__":
    N, Cin, H, W = 2, 4, 16, 16
    Cout = 8   # Cin != Cout -> downsample path active (stride=1); W*Cout = 128 lanes

    key = jax.random.PRNGKey(0)
    kx, kp = jax.random.split(key)
    x_nchw = jax.random.normal(kx, (N, Cin, H, W), jnp.float32)
    kernel_p, ref_p = make_params(kp, Cin, Cout, W)

    x_nhwc = jnp.transpose(x_nchw, (0, 2, 3, 1))
    y_nhwc = ep_forward(x_nhwc, kernel_p)
    y_nhwc = jax.block_until_ready(y_nhwc)
    y_nchw = jnp.transpose(y_nhwc, (0, 3, 1, 2))

    y_ref = ref_forward_nchw(x_nchw, ref_p, Cout)
    assert y_nchw.shape == (N, Cout, H, W)
    assert jnp.allclose(y_nchw, y_ref, atol=1e-4, rtol=1e-4), (
        float(jnp.max(jnp.abs(y_nchw - y_ref))))
    print("KERNEL_OK")
</pallas_src>

<mosaic_0001>
module attributes {stable_mosaic.version = 11 : i64} {
  func.func @ep_kernel(%arg0: i32, %arg1: memref<1x16x64xf32, #tpu.memory_space<vmem>>, %arg2: memref<64x256xf32, #tpu.memory_space<vmem>>, %arg3: memref<1x128xf32, #tpu.memory_space<vmem>>, %arg4: memref<9x128xf32, #tpu.memory_space<vmem>>, %arg5: memref<1x128xf32, #tpu.memory_space<vmem>>, %arg6: memref<128x128xf32, #tpu.memory_space<vmem>>, %arg7: memref<1x128xf32, #tpu.memory_space<vmem>>, %arg8: memref<1x16x128xf32, #tpu.memory_space<vmem>>) attributes {dimension_semantics = [#tpu.dimension_semantics<parallel>], iteration_bounds = array<i64: 2>, scalar_prefetch = 0 : i64, scratch_operands = 0 : i64, tpu.core_type = #tpu.core_type<tc>, window_params = [{transform_indices = @transform_0, window_bounds = array<i64: 1, 16, 64>}, {pipeline_mode = #tpu.pipeline_mode<synchronous>, transform_indices = @transform_1, window_bounds = array<i64: 64, 256>}, {pipeline_mode = #tpu.pipeline_mode<synchronous>, transform_indices = @transform_2, window_bounds = array<i64: 1, 128>}, {pipeline_mode = #tpu.pipeline_mode<synchronous>, transform_indices = @transform_3, window_bounds = array<i64: 9, 128>}, {pipeline_mode = #tpu.pipeline_mode<synchronous>, transform_indices = @transform_4, window_bounds = array<i64: 1, 128>}, {pipeline_mode = #tpu.pipeline_mode<synchronous>, transform_indices = @transform_5, window_bounds = array<i64: 128, 128>}, {pipeline_mode = #tpu.pipeline_mode<synchronous>, transform_indices = @transform_6, window_bounds = array<i64: 1, 128>}, {transform_indices = @transform_7, window_bounds = array<i64: 1, 16, 128>}]} {
    %c0 = arith.constant 0 : index
    %c0_0 = arith.constant 0 : index
    %c0_1 = arith.constant 0 : index
    %0 = vector.load %arg1[%c0, %c0_0, %c0_1] : memref<1x16x64xf32, #tpu.memory_space<vmem>>, vector<1x16x64xf32>
    %1 = vector.shape_cast %0 : vector<1x16x64xf32> to vector<16x64xf32>
    %c0_2 = arith.constant 0 : index
    %c0_3 = arith.constant 0 : index
    %2 = vector.load %arg2[%c0_2, %c0_3] : memref<64x256xf32, #tpu.memory_space<vmem>>, vector<64x256xf32>
    %cst = arith.constant dense<0.000000e+00> : vector<16x256xf32>
    %3 = tpu.matmul %1, %2, %cst {dimension_numbers = #tpu.dot_dimension_numbers<[1], [0], [0], [1], [0, 0, 1, 1], [], []>} : vector<16x64xf32>, vector<64x256xf32>, vector<16x256xf32> -> vector<16x256xf32>
    %4 = vector.extract_strided_slice %3 {offsets = [0, 0], sizes = [16, 128], strides = [1, 1]} : vector<16x256xf32> to vector<16x128xf32>
    %c0_4 = arith.constant 0 : index
    %c0_5 = arith.constant 0 : index
    %5 = vector.load %arg3[%c0_4, %c0_5] : memref<1x128xf32, #tpu.memory_space<vmem>>, vector<1x128xf32>
    %6 = vector.broadcast %5 : vector<1x128xf32> to vector<16x128xf32>
    %7 = arith.addf %4, %6 : vector<16x128xf32>
    %cst_6 = arith.constant 0.000000e+00 : f32
    %8 = vector.broadcast %cst_6 : f32 to vector<16x128xf32>
    %9 = arith.cmpf oge, %7, %8 : vector<16x128xf32>
    %cst_7 = arith.constant 0.00999999977 : f32
    %10 = vector.broadcast %cst_7 : f32 to vector<16x128xf32>
    %11 = arith.mulf %10, %7 : vector<16x128xf32>
    %12 = arith.select %9, %7, %11 : vector<16x128xi1>, vector<16x128xf32>
    %13 = vector.extract_strided_slice %3 {offsets = [0, 128], sizes = [16, 128], strides = [1, 1]} : vector<16x256xf32> to vector<16x128xf32>
    %c0_i32 = arith.constant 0 : i32
    %14 = arith.sitofp %c0_i32 : i32 to f32
    %15 = vector.broadcast %14 : f32 to vector<1x128xf32>
    %16 = tpu.concatenate %15, %12 in 0 : vector<1x128xf32>, vector<16x128xf32> -> vector<17x128xf32>
    %17 = vector.broadcast %14 : f32 to vector<1x128xf32>
    %18 = tpu.concatenate %16, %17 in 0 : vector<17x128xf32>, vector<1x128xf32> -> vector<18x128xf32>
    %19 = vector.broadcast %14 : f32 to vector<18x8xf32>
    %20 = tpu.concatenate %19, %18 in 1 : vector<18x8xf32>, vector<18x128xf32> -> vector<18x136xf32>
    %21 = vector.broadcast %14 : f32 to vector<18x8xf32>
    %22 = tpu.concatenate %20, %21 in 1 : vector<18x136xf32>, vector<18x8xf32> -> vector<18x144xf32>
    %c0_8 = arith.constant 0 : index
    %c0_9 = arith.constant 0 : index
    %23 = vector.load %arg4[%c0_8, %c0_9] : memref<9x128xf32, #tpu.memory_space<vmem>>, vector<9x128xf32>
    %c0_10 = arith.constant 0 : index
    %c0_11 = arith.constant 0 : index
    %24 = vector.load %arg5[%c0_10, %c0_11] : memref<1x128xf32, #tpu.memory_space<vmem>>, vector<1x128xf32>
    %25 = vector.shape_cast %24 : vector<1x128xf32> to vector<1x128xf32>
    %26 = vector.broadcast %25 : vector<1x128xf32> to vector<16x128xf32>
    %27 = vector.extract_strided_slice %22 {offsets = [0, 0], sizes = [16, 128], strides = [1, 1]} : vector<18x144xf32> to vector<16x128xf32>
    %28 = vector.extract_strided_slice %23 {offsets = [0, 0], sizes = [1, 128], strides = [1, 1]} : vector<9x128xf32> to vector<1x128xf32>
    %29 = vector.shape_cast %28 : vector<1x128xf32> to vector<128xf32>
    %30 = vector.shape_cast %29 : vector<128xf32> to vector<1x128xf32>
    %31 = vector.broadcast %30 : vector<1x128xf32> to vector<16x128xf32>
    %32 = arith.mulf %27, %31 : vector<16x128xf32>
    %33 = arith.addf %26, %32 : vector<16x128xf32>
    %34 = vector.extract_strided_slice %22 {offsets = [0, 8], sizes = [16, 128], strides = [1, 1]} : vector<18x144xf32> to vector<16x128xf32>
    %35 = vector.extract_strided_slice %23 {offsets = [1, 0], sizes = [1, 128], strides = [1, 1]} : vector<9x128xf32> to vector<1x128xf32>
    %36 = vector.shape_cast %35 : vector<1x128xf32> to vector<128xf32>
    %37 = vector.shape_cast %36 : vector<128xf32> to vector<1x128xf32>
    %38 = vector.broadcast %37 : vector<1x128xf32> to vector<16x128xf32>
    %39 = arith.mulf %34, %38 : vector<16x128xf32>
    %40 = arith.addf %33, %39 : vector<16x128xf32>
    %41 = vector.extract_strided_slice %22 {offsets = [0, 16], sizes = [16, 128], strides = [1, 1]} : vector<18x144xf32> to vector<16x128xf32>
    %42 = vector.extract_strided_slice %23 {offsets = [2, 0], sizes = [1, 128], strides = [1, 1]} : vector<9x128xf32> to vector<1x128xf32>
    %43 = vector.shape_cast %42 : vector<1x128xf32> to vector<128xf32>
    %44 = vector.shape_cast %43 : vector<128xf32> to vector<1x128xf32>
    %45 = vector.broadcast %44 : vector<1x128xf32> to vector<16x128xf32>
    %46 = arith.mulf %41, %45 : vector<16x128xf32>
    %47 = arith.addf %40, %46 : vector<16x128xf32>
    %48 = vector.extract_strided_slice %22 {offsets = [1, 0], sizes = [16, 128], strides = [1, 1]} : vector<18x144xf32> to vector<16x128xf32>
    %49 = vector.extract_strided_slice %23 {offsets = [3, 0], sizes = [1, 128], strides = [1, 1]} : vector<9x128xf32> to vector<1x128xf32>
    %50 = vector.shape_cast %49 : vector<1x128xf32> to vector<128xf32>
    %51 = vector.shape_cast %50 : vector<128xf32> to vector<1x128xf32>
    %52 = vector.broadcast %51 : vector<1x128xf32> to vector<16x128xf32>
    %53 = arith.mulf %48, %52 : vector<16x128xf32>
    %54 = arith.addf %47, %53 : vector<16x128xf32>
    %55 = vector.extract_strided_slice %22 {offsets = [1, 8], sizes = [16, 128], strides = [1, 1]} : vector<18x144xf32> to vector<16x128xf32>
    %56 = vector.extract_strided_slice %23 {offsets = [4, 0], sizes = [1, 128], strides = [1, 1]} : vector<9x128xf32> to vector<1x128xf32>
    %57 = vector.shape_cast %56 : vector<1x128xf32> to vector<128xf32>
    %58 = vector.shape_cast %57 : vector<128xf32> to vector<1x128xf32>
    %59 = vector.broadcast %58 : vector<1x128xf32> to vector<16x128xf32>
    %60 = arith.mulf %55, %59 : vector<16x128xf32>
    %61 = arith.addf %54, %60 : vector<16x128xf32>
    %62 = vector.extract_strided_slice %22 {offsets = [1, 16], sizes = [16, 128], strides = [1, 1]} : vector<18x144xf32> to vector<16x128xf32>
    %63 = vector.extract_strided_slice %23 {offsets = [5, 0], sizes = [1, 128], strides = [1, 1]} : vector<9x128xf32> to vector<1x128xf32>
    %64 = vector.shape_cast %63 : vector<1x128xf32> to vector<128xf32>
    %65 = vector.shape_cast %64 : vector<128xf32> to vector<1x128xf32>
    %66 = vector.broadcast %65 : vector<1x128xf32> to vector<16x128xf32>
    %67 = arith.mulf %62, %66 : vector<16x128xf32>
    %68 = arith.addf %61, %67 : vector<16x128xf32>
    %69 = vector.extract_strided_slice %22 {offsets = [2, 0], sizes = [16, 128], strides = [1, 1]} : vector<18x144xf32> to vector<16x128xf32>
    %70 = vector.extract_strided_slice %23 {offsets = [6, 0], sizes = [1, 128], strides = [1, 1]} : vector<9x128xf32> to vector<1x128xf32>
    %71 = vector.shape_cast %70 : vector<1x128xf32> to vector<128xf32>
    %72 = vector.shape_cast %71 : vector<128xf32> to vector<1x128xf32>
    %73 = vector.broadcast %72 : vector<1x128xf32> to vector<16x128xf32>
    %74 = arith.mulf %69, %73 : vector<16x128xf32>
    %75 = arith.addf %68, %74 : vector<16x128xf32>
    %76 = vector.extract_strided_slice %22 {offsets = [2, 8], sizes = [16, 128], strides = [1, 1]} : vector<18x144xf32> to vector<16x128xf32>
    %77 = vector.extract_strided_slice %23 {offsets = [7, 0], sizes = [1, 128], strides = [1, 1]} : vector<9x128xf32> to vector<1x128xf32>
    %78 = vector.shape_cast %77 : vector<1x128xf32> to vector<128xf32>
    %79 = vector.shape_cast %78 : vector<128xf32> to vector<1x128xf32>
    %80 = vector.broadcast %79 : vector<1x128xf32> to vector<16x128xf32>
    %81 = arith.mulf %76, %80 : vector<16x128xf32>
    %82 = arith.addf %75, %81 : vector<16x128xf32>
    %83 = vector.extract_strided_slice %22 {offsets = [2, 16], sizes = [16, 128], strides = [1, 1]} : vector<18x144xf32> to vector<16x128xf32>
    %84 = vector.extract_strided_slice %23 {offsets = [8, 0], sizes = [1, 128], strides = [1, 1]} : vector<9x128xf32> to vector<1x128xf32>
    %85 = vector.shape_cast %84 : vector<1x128xf32> to vector<128xf32>
    %86 = vector.shape_cast %85 : vector<128xf32> to vector<1x128xf32>
    %87 = vector.broadcast %86 : vector<1x128xf32> to vector<16x128xf32>
    %88 = arith.mulf %83, %87 : vector<16x128xf32>
    %89 = arith.addf %82, %88 : vector<16x128xf32>
    %cst_12 = arith.constant 0.000000e+00 : f32
    %90 = vector.broadcast %cst_12 : f32 to vector<16x128xf32>
    %91 = arith.cmpf oge, %89, %90 : vector<16x128xf32>
    %cst_13 = arith.constant 0.00999999977 : f32
    %92 = vector.broadcast %cst_13 : f32 to vector<16x128xf32>
    %93 = arith.mulf %92, %89 : vector<16x128xf32>
    %94 = arith.select %91, %89, %93 : vector<16x128xi1>, vector<16x128xf32>
    %c0_14 = arith.constant 0 : index
    %c0_15 = arith.constant 0 : index
    %95 = vector.load %arg6[%c0_14, %c0_15] : memref<128x128xf32, #tpu.memory_space<vmem>>, vector<128x128xf32>
    %cst_16 = arith.constant dense<0.000000e+00> : vector<16x128xf32>
    %96 = tpu.matmul %94, %95, %cst_16 {dimension_numbers = #tpu.dot_dimension_numbers<[1], [0], [0], [1], [0, 0, 1, 1], [], []>} : vector<16x128xf32>, vector<128x128xf32>, vector<16x128xf32> -> vector<16x128xf32>
    %97 = arith.addf %13, %96 : vector<16x128xf32>
    %c0_17 = arith.constant 0 : index
    %c0_18 = arith.constant 0 : index
    %98 = vector.load %arg7[%c0_17, %c0_18] : memref<1x128xf32, #tpu.memory_space<vmem>>, vector<1x128xf32>
    %99 = vector.broadcast %98 : vector<1x128xf32> to vector<16x128xf32>
    %100 = arith.addf %97, %99 : vector<16x128xf32>
    %cst_19 = arith.constant 0.000000e+00 : f32
    %101 = vector.broadcast %cst_19 : f32 to vector<16x128xf32>
    %102 = arith.cmpf oge, %100, %101 : vector<16x128xf32>
    %cst_20 = arith.constant 0.00999999977 : f32
    %103 = vector.broadcast %cst_20 : f32 to vector<16x128xf32>
    %104 = arith.mulf %103, %100 : vector<16x128xf32>
    %105 = arith.select %102, %100, %104 : vector<16x128xi1>, vector<16x128xf32>
    %c0_21 = arith.constant 0 : index
    %c0_22 = arith.constant 0 : index
    %c0_23 = arith.constant 0 : index
    %106 = vector.load %arg8[%c0_21, %c0_22, %c0_23] : memref<1x16x128xf32, #tpu.memory_space<vmem>>, vector<1x16x128xf32>
    %107 = vector.shape_cast %106 : vector<1x16x128xf32> to vector<16x128xf32>
    %108 = vector.shape_cast %105 : vector<16x128xf32> to vector<1x16x128xf32>
    tpu.vector_store %arg8[%c0_21, %c0_22, %c0_23], %108 {strides = array<i32>} : memref<1x16x128xf32, #tpu.memory_space<vmem>>, vector<1x16x128xf32>,
    return
  }
  func.func @transform_0(%arg0: i32) -> (i32, i32, i32) {
    %c0_i32 = arith.constant 0 : i32
    %c0_i32_0 = arith.constant 0 : i32
    %c0_i32_1 = arith.constant 0 : i32
    return %arg0, %c0_i32, %c0_i32_0 : i32, i32, i32
  }
  func.func @transform_1(%arg0: i32) -> (i32, i32) {
    %c0_i32 = arith.constant 0 : i32
    %c0_i32_0 = arith.constant 0 : i32
    %c0_i32_1 = arith.constant 0 : i32
    return %c0_i32, %c0_i32_0 : i32, i32
  }
  func.func @transform_2(%arg0: i32) -> (i32, i32) {
    %c0_i32 = arith.constant 0 : i32
    %c0_i32_0 = arith.constant 0 : i32
    %c0_i32_1 = arith.constant 0 : i32
    return %c0_i32, %c0_i32_0 : i32, i32
  }
  func.func @transform_3(%arg0: i32) -> (i32, i32) {
    %c0_i32 = arith.constant 0 : i32
    %c0_i32_0 = arith.constant 0 : i32
    %c0_i32_1 = arith.constant 0 : i32
    return %c0_i32, %c0_i32_0 : i32, i32
  }
  func.func @transform_4(%arg0: i32) -> (i32, i32) {
    %c0_i32 = arith.constant 0 : i32
    %c0_i32_0 = arith.constant 0 : i32
    %c0_i32_1 = arith.constant 0 : i32
    return %c0_i32, %c0_i32_0 : i32, i32
  }
  func.func @transform_5(%arg0: i32) -> (i32, i32) {
    %c0_i32 = arith.constant 0 : i32
    %c0_i32_0 = arith.constant 0 : i32
    %c0_i32_1 = arith.constant 0 : i32
    return %c0_i32, %c0_i32_0 : i32, i32
  }
  func.func @transform_6(%arg0: i32) -> (i32, i32) {
    %c0_i32 = arith.constant 0 : i32
    %c0_i32_0 = arith.constant 0 : i32
    %c0_i32_1 = arith.constant 0 : i32
    return %c0_i32, %c0_i32_0 : i32, i32
  }
  func.func @transform_7(%arg0: i32) -> (i32, i32, i32) {
    %c0_i32 = arith.constant 0 : i32
    %c0_i32_0 = arith.constant 0 : i32
    %c0_i32_1 = arith.constant 0 : i32
    return %arg0, %c0_i32, %c0_i32_0 : i32, i32, i32
  }
}

</mosaic_0001>

<bundles_post_ra>
// kernel: tpu_custom_call.1
= control target key start
LH: loop header
LB: loop body
LE: loop exit
PB: predicated region body
PF: predicated region fallthrough
CT: control target
= control target key end

     0   :  { %s1804_s0 = inlined_call_operand.hbm [shape: f32[2,16,64], index: 0, kind: input, shape index: {}]   ;;  %s1805_s1 = inlined_call_operand.hbm [shape: f32[64,256], index: 1, kind: input, shape index: {}]   ;;  %s1806_s2 = inlined_call_operand.vmem [shape: f32[1,128], index: 2, kind: input, shape index: {}]   ;;  %s1807_s3 = inlined_call_operand.hbm [shape: f32[9,128], index: 3, kind: input, shape index: {}]   ;;  %s1808_s4 = inlined_call_operand.vmem [shape: f32[1,128], index: 4, kind: input, shape index: {}]   ;;  %s1809_s5 = inlined_call_operand.hbm [shape: f32[128,128], index: 5, kind: input, shape index: {}]   ;;  %s1810_s6 = inlined_call_operand.vmem [shape: f32[1,128], index: 6, kind: input, shape index: {}]   ;;  %s1811_s7 = inlined_call_operand.hbm [shape: f32[2,16,128], index: 7, kind: output, shape index: {}]  }
   0x1   :  { %1818 = sst [smem:[#allocation15_spill]] %s1805_s1 }
   0x2   :  { %12 = vsyncpa [#allocation3], 0 }
   0x3   :  { %14 = vsyncpa [#allocation3 + $0x1], 0 }
   0x4   :  { %15 = vsyncpa [#allocation6], 0 }
   0x5   :  { %16 = vsyncpa [#allocation9], 0 }
   0x6   :  { %17 = vsyncpa [#allocation4], 0 }
   0x7   :  { %19 = vsyncpa [#allocation4 + $0x1], 0  ;;  %s1416_s24 = smov 0   ;;  %s1418_s25 = smov 0  }
   0x8   :  { %s1420_s26 = smov 0   ;;  %s1422_s27 = smov 0  }
   0x9 LB: > { %s1437_s28 = sadd.s32 4294967295, %s1359_s27   ;;  %s1013_s29 = sadd.s32 4294967294, %s1359_s27   ;;  %s1359_s27 = sphi %s1422_s27, %s1841_s27   ;;  %s1355_s26 = sphi %s1420_s26, %s1840_s26   ;;  %s1351_s25 = sphi %s1418_s25, %s1839_s25   ;;  %s1347_s24 = sphi %s1416_s24, %s1838_s24  }
   0xa   : > { %p45_p0 = scmp.ne.s32.totalorder %s1351_s25, %s1347_s24  ;;  %p1812_p1 = scmp.eq.s32.totalorder %s1437_s28, 0 }
   0xb   : > { %p201_p3 = scmp.eq.s32.totalorder %s1013_s29, 1  ;;  %p1014_p5 = scmp.ge.s32.totalorder %s1359_s27, 1 }
   0xc   : > { %p1446_p4 = por %p1812_p1, %p45_p0  ;;  %p208_p7 = scmp.lt.s32.totalorder %s1359_s27, 3 }
   0xd   : > { %p1451_p6 = por %p201_p3, %p45_p0  ;;  %s1361_s10 = smov [#allocation5]  }
   0xe   : > { %s1819_s30 = scalar_select %p1446_p4, 1, 0 }
   0xf   : > { %s1820_s8 = scalar_select %p1451_p6, 1, 0 }
  0x10   : > { %p1456_p8 = pnand %p1014_p5, %p208_p7  ;;  %s220_s11 = sshll.u32 %s1361_s10, 4  ;;  %s221_s11 = int_to_ptr.vmem [resolvable:$true] %s220_s11 }
  0x11   : > { %s1362_s13 = smov [#allocation7]   ;;  %s1192_s15 = scalar_lea.vmem %s221_s11, 2048 }
  0x12   : > { %s1821_s9 = scalar_select %p1456_p8, 1, 0 }
  0x13   : > { %p1110_p9 = pneg %p1456_p8  ;;  %s236_s14 = sshll.u32 %s1362_s13, 4  ;;  %s237_s14 = int_to_ptr.vmem [resolvable:$true] %s236_s14 }
  0x14   : > { %p1193_p13 = scmp.ne.s32.totalorder %s221_s11, %s1192_s15  ;;  %p1200_p5 = scmp.lt.s32.totalorder %s221_s11, %s221_s11 }
  0x15   : > { %p1465_p11 = pnand %p1110_p9, %p1812_p1  ;;  %p1201_p7 = scmp.lt.s32.totalorder %s1192_s15, %s1192_s15 }
  0x17   : > { %p1183_p12 = pneg %p1465_p11  ;;  %p1202_p10 = por %p1201_p7, %p1200_p5 }
  0x19   : > { %p1195_p0 = pnand %p1193_p13, %p1183_p12 }
  0x1b   : > { %p1196_p3 = pneg %p1195_p0 }
  0x1d   : > { %p1203_p9 = pnand %p1202_p10, %p1196_p3 }
  0x1f   : > { %1206 = shalt.err (!%p1203_p9)
}
  0x20   : > { %s1363_s16 = smov 256   ;;  %s1364_s17 = smov 16  }
  0x21   : > { %s1823_s1 = sld [smem:[#allocation15_spill]]  ;;  %s1218_s20 = scalar_lea.vmem %s237_s14, 256 }
  0x22   : > { %p1219_p1 = scmp.ne.s32.totalorder %s237_s14, %s1218_s20  ;;  %p1226_p2 = scmp.lt.s32.totalorder %s237_s14, %s237_s14 }
  0x23   : > { %p1227_p6 = scmp.lt.s32.totalorder %s1218_s20, %s1218_s20 }
  0x24   : > { %p1221_p13 = pnand %p1219_p1, %p1183_p12 }
  0x25   : > { %p1228_p5 = por %p1227_p6, %p1226_p2 }
  0x26   : > { %p1222_p0 = pneg %p1221_p13 }
  0x27   : > { %1113 = dma.hbm_to_vmem [thread:$0]  (!%p1465_p11), %s1823_s1, 2048, %s221_s11, [#allocation6], %s1363_s16, %s1363_s16, %s1364_s17  }
  0x28   : > { %p1229_p10 = pnand %p1228_p5, %p1222_p0 }
  0x2a   : > { %1232 = shalt.err (!%p1229_p10)
}
  0x2b   : > { %s1813_s21 = smov 128   ;;  %s1814_s22 = smov 8  }
  0x2c   : > { %1116 = dma.hbm_to_vmem [thread:$0]  (!%p1465_p11), %s1807_s3, 256, %s237_s14, [#allocation6], %s1813_s21, %s1813_s21, %s1814_s22  }
  0x2d   : > { %s1367_s10 = smov [#allocation8]   ;;  %s1491_s13 = sadd.s32 1, %s1359_s27  }
  0x2e   : > { %s252_s11 = sshll.u32 %s1367_s10, 4  ;;  %s253_s11 = int_to_ptr.vmem [resolvable:$true] %s252_s11 }
  0x2f   : > { %s1244_s15 = scalar_lea.vmem %s253_s11, 2048  ;;  %p1252_p3 = scmp.lt.s32.totalorder %s253_s11, %s253_s11 }
  0x30   : > { %p1245_p1 = scmp.ne.s32.totalorder %s253_s11, %s1244_s15  ;;  %p1253_p7 = scmp.lt.s32.totalorder %s1244_s15, %s1244_s15 }
  0x32   : > { %p1247_p2 = pnand %p1245_p1, %p1183_p12  ;;  %p1254_p9 = por %p1253_p7, %p1252_p3 }
  0x34   : > { %p1248_p6 = pneg %p1247_p2 }
  0x36   : > { %p1255_p13 = pnand %p1254_p9, %p1248_p6 }
  0x38   : > { %1258 = shalt.err (!%p1255_p13)
}
  0x39   : > { %1119 = dma.hbm_to_vmem [thread:$0]  (!%p1465_p11), %s1809_s5, 2048, %s253_s11, [#allocation9], %s1813_s21, %s1813_s21, %s1814_s22  }
  0x3a   : > { %s29_s17 = ssub.s32 %s1359_s27, %s1491_s13  ;;  %s32_s12 = sadd.s32 1, %s1355_s26 }
  0x3b   : > { %p30_p12 = scmp.eq.s32.totalorder %s29_s17, 0  ;;  %p39_p0 = scmp.ne.s32.totalorder %s1355_s26, %s1351_s25 }
  0x3c   : > { %p40_p5 = scmp.eq.s32.totalorder %s1359_s27, 0  ;;  %p1131_p10 = scmp.lt.s32.totalorder %s1359_s27, 2 }
  0x3d   : > { %s1512_s18 = scalar_select %p30_p12, %s1355_s26, %s32_s12  }
  0x3e   : > { %p41_p1 = por %p40_p5, %p39_p0  ;;  %p1824_p2 = scmp.eq.s32.totalorder %s1437_s28, 1 }
  0x3f   : > { %s269_s20 = sand.u32 1, %s1355_s26   ;;  %s1039_s23 = sshll.u32 %s1359_s27, 8 }
  0x40   : > { %p1516_p6 = por %p1824_p2, %p39_p0  ;;  %s1019_s29 = sshll.u32 %s269_s20, 4 }
  0x41   : > { %s1525_s11 = scalar_lea.hbm %s1804_s0, %s1039_s23  ;;  %s273_s14 = scalar_lea.vmem [#allocation2], %s1019_s29 }
  0x42   : > { %s1825_s19 = scalar_select %p1516_p6, 1, 0 }
  0x43   : > { %s280_s16 = sshll.u32 %s273_s14, 4  ;;  %p1527_p11 = pnand %p1131_p10, %p41_p1  ;;  %s1531_s16 = int_to_ptr.vmem [resolvable:$true] %s280_s16 }
  0x44   : > { %s1533_s12 = scalar_lea.sflag [#allocation3], %s269_s20  ;;  %s1259_s21 = scalar_lea.hbm %s1525_s11, 256 }
  0x45   : > { %p1260_p3 = scmp.ne.s32.totalorder %s1525_s11, %s1259_s21  ;;  %p1261_p7 = pneg %p1527_p11 }
  0x46   : > { %s1264_s29 = scalar_lea.hbm %s1804_s0, 512  ;;  %p1265_p12 = scmp.lt.s32.totalorder %s1525_s11, %s1804_s0 }
  0x47   : > { %p1262_p9 = pnand %p1261_p7, %p1260_p3  ;;  %p1266_p0 = scmp.lt.s32.totalorder %s1264_s29, %s1259_s21 }
  0x49   : > { %p1263_p13 = pneg %p1262_p9  ;;  %p1267_p5 = por %p1266_p0, %p1265_p12 }
  0x4b   : > { %p1268_p10 = pnand %p1267_p5, %p1263_p13 }
  0x4d   : > { %1271 = shalt.err (!%p1268_p10)
}
  0x4e   : > { %s1272_s20 = scalar_lea.vmem %s1531_s16, 256  ;;  %s1368_s22 = smov [#allocation2]  }
  0x4f   : > { %p1273_p1 = scmp.ne.s32.totalorder %s1531_s16, %s1272_s20  ;;  %s1277_s1 = sshll.u32 %s1368_s22, 4  ;;  %s1278_s1 = int_to_ptr.vmem [resolvable:$false] %s1277_s1 }
  0x50   : > { %s1279_s23 = scalar_lea.vmem %s1278_s1, 512  ;;  %p1280_p9 = scmp.lt.s32.totalorder %s1531_s16, %s1278_s1 }
  0x51   : > { %p1275_p2 = pnand %p1273_p1, %p1261_p7  ;;  %p1281_p6 = scmp.lt.s32.totalorder %s1279_s23, %s1272_s20 }
  0x53   : > { %p1276_p3 = pneg %p1275_p2  ;;  %p1282_p4 = por %p1281_p6, %p1280_p9 }
  0x55   : > { %p1283_p8 = pnand %p1282_p4, %p1276_p3 }
  0x57   : > { %1286 = shalt.err (!%p1283_p8)
}
  0x58   : > { %s1827_s21 = smov 8   ;;  %s1828_s10 = smov 128  }
  0x59   : > { %1123 = dma.hbm_to_vmem [thread:$0]  (!%p1527_p11), %s1525_s11, 256, %s1531_s16, %s1533_s12, %s1828_s10, %s1828_s10, %s1827_s21  }
  0x5a   : > { %p1829_p7 = scmp.ne.s32.totalorder %s1821_s9, 0 }
  0x5b   : > { %s1560_s22 = sand.u32 (!%p1829_p7), 1, %s1351_s25   ;;  %p1830_p4 = scmp.ne.s32.totalorder (!%p1829_p7), %s1819_s30, 0 }
  0x5c   : > { %292 = sbr.rel (%p1829_p7) target bundleno = 822 (0x336), region = 48  ;;  %s1023_s1 = sshll.u32 (!%p1829_p7), %s1560_s22, 4 }
  0x5d   : > { %s295_s29 = scalar_lea.sflag (!%p1829_p7), [#allocation3], %s1560_s22  ;;  %s1566_s17 = scalar_lea.vmem (!%p1829_p7), [#allocation2], %s1023_s1 }
  0x61   : > { %1330 = dma.done.wait (%p1830_p4), %s295_s29, 256  }
  0x62   : > { %1332 = vsyncadd (%p1830_p4), %s295_s29, 4294967040  ;;  %p1831_p8 = scmp.eq.s32.totalorder %s1437_s28, 0 }
  0x64   : > { %1334 = dma.done.wait (%p1831_p8), [#allocation6], 2304   ;;  %p1832_p6 = pmov %p1831_p8 }
  0x66   : > { %1336 = vsyncadd (%p1832_p6), [#allocation6], 4294964992  ;;  %p1833_p11 = pmov %p1832_p6 }
  0x67   : > { %p1834_p13 = pmov %p1832_p6 }
  0x68   : > { %1338 = dma.done.wait (%p1833_p11), [#allocation9], 2048  }
  0x69   : > { %1340 = vsyncadd (%p1834_p13), [#allocation9], 4294965248  ;;  %v1369_v0 = vmov 0.0   ;;  %v495_v1 = vlaneseq  ;;  %v358_v3 = vld [vmem:[#allocation5 + $0x78] sm:$0xff]  ;;  %v357_v4 = vld [vmem:[#allocation5 + $0x70] sm:$0xff]  ;;  %s1370_s30 = smov 8  }
  0x6a   : > { %430 = vmatprep.mubr.f32.mxu0 %v1369_v0  ;;  %v356_v5 = vld [vmem:[#allocation5 + $0x68] sm:$0xff]  ;;  %382 = vmatprep.subr.mxu0 %v358_v3  ;;  %v355_v6 = vld [vmem:[#allocation5 + $0x60] sm:$0xff]  ;;  %v354_v7 = vld [vmem:[#allocation5 + $0x58] sm:$0xff]  ;;  %vm359_vm0 = vcmask 523264   ;;  %s1371_s9 = smov 16   ;;  %vm460_vm2 = vcmask 1040384  }
  0x6b   : > { %v1580_v2 = vshrl.u32 %v495_v1, 7  ;;  %383 = vmatpush1.msra.mxu0 %v357_v4  ;;  %v353_v8 = vld [vmem:[#allocation5 + $0x50] sm:$0xff]  ;;  %v352_v10 = vld [vmem:[#allocation5 + $0x48] sm:$0xff]  ;;  %v351_v11 = vld [vmem:[#allocation5 + $0x40] sm:$0xff]  ;;  %vm479_vm4 = vcmask 64512   ;;  %s1372_s12 = smov 120  }
  0x6c   : > { %384 = vmatprep.subr.mxu0 %v356_v5  ;;  %v350_v12 = vld [vmem:[#allocation5 + $0x38] sm:$0xff]  ;;  %v1583_v13 = vld [vmem:[#allocation7] sm:$0xff]  ;;  %v349_v14 = vld [vmem:[#allocation5 + $0x30] sm:$0xff]  ;;  %s1373_s15 = smov 112   ;;  %vm575_vm5 = vcmask 1046528   ;;  %vm683_vm6 = vcmask 1045504  }
  0x6d   : > { %v505_v9 = vsub.s32 1, %v1580_v2  ;;  %385 = vmatpush1.msra.mxu0 %v355_v6  ;;  %v348_v16 = vld [vmem:[#allocation5 + $0x28] sm:$0xff]  ;;  %v347_v17 = vld [vmem:[#allocation5 + $0x20] sm:$0xff]  ;;  %v346_v18 = vld [vmem:[#allocation5 + $0x18] sm:$0xff]  ;;  %v536_v24 = vsub.s32 2, %v1580_v2  ;;  %v587_v26 = vsub.s32 4, %v1580_v2 }
  0x6e   : > { %386 = vmatprep.subr.mxu0 %v354_v7  ;;  %v345_v19 = vld [vmem:[#allocation5 + $0x10] sm:$0xff]  ;;  %v344_v20 = vld [vmem:[#allocation5 + $0x8] sm:$0xff]  ;;  %v343_v21 = vld [vmem:[#allocation5] sm:$0xff]  ;;  %v695_v28 = vsub.s32 7, %v1580_v2  ;;  %v631_v44 = vsub.s32 5, %v1580_v2  ;;  %v567_v4 = vsub.s32 3, %v1580_v2 }
  0x6f   : > { %387 = vmatpush1.msra.mxu0 %v353_v8  ;;  %v506_v15 = vrot.slane %v1583_v13, %v505_v9  ;;  %v341_v22 = vld [vmem:[%s1566_s17] sm:$0xff]  ;;  %v342_v23 = vld [vmem:[%s1566_s17 + $0x8] sm:$0xff]  ;;  %v537_v25 = vrot.slane %v1583_v13, %v536_v24  ;;  %v588_v27 = vrot.slane %v1583_v13, %v587_v26  ;;  %vm527_vm7 = vcmask 982016   ;;  %s340_s10 = scalar_lea.vmem [#allocation10], %s1023_s1  ;;  %s1040_s17 = sshll.u32 %s1437_s28, 8 }
  0x70   : > { %388 = vmatprep.subr.mxu0 %v352_v10  ;;  %v696_v29 = vrot.slane %v1583_v13, %v695_v28  ;;  %v1030_v30 = vld [vmem:[%s1806_s2] ss:$0 sm:$0xff]  ;;  %v632_v46 = vrot.slane %v1583_v13, %v631_v44  ;;  %v1032_v47 = vld [vmem:[#allocation7 + $0x8] ss:$0 sm:$0xff]  ;;  %v800_v9 = vld [vmem:[#allocation8 + $0x68] sm:$0xff]  ;;  %v675_v10 = vsub.s32 6, %v1580_v2  ;;  %s1760_s16 = scalar_lea.hbm %s1811_s7, %s1040_s17 }
  0x71   : > { %389 = vmatpush1.msra.mxu0 %v351_v11  ;;  %508 = vrot.lane.b32.xlu1 %v506_v15, %s1370_s30  ;;  %v802_v61 = vld [vmem:[#allocation8 + $0x78] sm:$0xff]  ;;  %v801_v8 = vld [vmem:[#allocation8 + $0x70] sm:$0xff]  ;;  %vm558_vm8 = vcmask 916480   ;;  %s911_s29 = sshll.u32 %s340_s10, 4  ;;  %s898_s1 = scalar_lea.sflag [#allocation4], %s1560_s22  ;;  %s1755_s29 = int_to_ptr.vmem [resolvable:$true] %s911_s29 }
  0x72   : > { %390 = vmatprep.subr.mxu0 %v350_v12  ;;  %1059 = vmatprep.subr.mxu1 %v802_v61  ;;  %p1835_p0 = scmp.ne.s32.totalorder %s1825_s19, 0  ;;  %s1374_s28 = smov [#allocation10]  }
  0x73   : > { %391 = vmatpush1.msra.mxu0 %v349_v14  ;;  %1060 = vmatpush3.msra.mxu1 %v802_v61 }
  0x74   : > { %392 = vmatprep.subr.mxu0 %v348_v16  ;;  %1061 = vmatprep.subr.mxu1 %v801_v8 }
  0x75   : > { %393 = vmatpush1.msra.mxu0 %v347_v17  ;;  %539 = vrot.lane.b32.xlu1 %v537_v25, %s1371_s9  ;;  %v568_v17 = vrot.slane %v1583_v13, %v567_v4 }
  0x76   : > { %394 = vmatprep.subr.mxu0 %v346_v18  ;;  %1062 = vmatpush3.msra.mxu1 %v801_v8 }
  0x77   : > { %395 = vmatpush1.msra.mxu0 %v345_v19  ;;  %1063 = vmatprep.subr.mxu1 %v800_v9 }
  0x78   : > { %396 = vmatprep.subr.mxu0 %v344_v20  ;;  %1064 = vmatpush3.msra.mxu1 %v800_v9 }
  0x79   : > { %397 = vmatpush1.msra.mxu0 %v343_v21  ;;  %590 = vrot.lane.b32.xlu1 %v588_v27, %s1370_s30 }
  0x7a   : > { %1028 = vmatmul.mubr.msk.f32.vlgmr.msra.gmra.mxu0 %vm359_vm0, %v341_v22  ;;  %v799_v22 = vld [vmem:[#allocation8 + $0x60] sm:$0xff] }
  0x7b   : > { %436 = vmatprep.mubr.f32.mxu0 %v1369_v0  ;;  %1065 = vmatprep.subr.mxu1 %v799_v22 }
  0x7c   : > { %1066 = vmatpush3.msra.mxu1 %v799_v22 }
  0x7d   : > { %698 = vrot.lane.b32.xlu1 %v696_v29, %s1370_s30 }
  0x7e   : > { %1029 = vmatmul.mubr.msk.f32.gmra.mxu0 %vm359_vm0, %v342_v23  ;;  %v676_v23 = vrot.slane %v1583_v13, %v675_v10 }
  0xe3   : > { %v509_v48 = vpop.permute.xlu1 %508 }
  0xe7   : > { %v540_v54 = vpop.permute.xlu1 %539 }
  0xeb   : > { %v591_v63 = vpop.permute.xlu1 %590 }
 0x13a   : > { %v432_v31 = vpop.f32.mrf.mxu0 }
 0x13b   : > { %v450_v32 = vadd.f32 %v1030_v30, %v432_v31 }
 0x13c   : > { %v1601_v33 = vpop.f32.mrf.mxu0 }
 0x13d   : > { %v454_v34 = vmul.f32 0.01, %v450_v32  ;;  %vm452_vm1 = vcmp.ge.f32.partialorder %v450_v32, 0.0 }
 0x13e   : > { %v438_v35 = vpop.f32.mrf.mxu0 }
 0x13f   : > { %v451_v36 = vadd.f32 %v1030_v30, %v438_v35  ;;  %v456_v37 = vsel %vm452_vm1, %v450_v32, %v454_v34  ;;  %v798_v30 = vld [vmem:[#allocation8 + $0x58] sm:$0xff] }
 0x140   : > { %v461_v38 = vrot.slane %v456_v37, 7  ;;  %v797_v37 = vld [vmem:[#allocation8 + $0x50] sm:$0xff]  ;;  %1067 = vmatprep.subr.mxu1 %v798_v30 }
 0x141   : > { %vm453_vm3 = vcmp.ge.f32.partialorder %v451_v36, 0.0  ;;  %v455_v39 = vmul.f32 0.01, %v451_v36  ;;  %1068 = vmatpush3.msra.mxu1 %v798_v30  ;;  %v792_v30 = vld [vmem:[#allocation8 + $0x28] sm:$0xff] }
 0x142   : > { %v466_v40 = vsel %vm460_vm2, 0.0, %v461_v38  ;;  %1069 = vmatprep.subr.mxu1 %v797_v37 }
 0x143   : > { %v457_v41 = vsel %vm453_vm3, %v451_v36, %v455_v39  ;;  %470 = vrot.lane.b32.xlu0 %v466_v40, %s1370_s30  ;;  %1070 = vmatpush3.msra.mxu1 %v797_v37 }
 0x144   : > { %v462_v42 = vrot.slane %v457_v41, 7 }
 0x146   : > { %v463_v43 = vsel %vm460_vm2, %v461_v38, %v462_v42  ;;  %v467_v45 = vsel %vm460_vm2, %v462_v42, 0.0 }
 0x147   : > { %472 = vrot.lane.b32.xlu0 %v463_v43, %s1370_s30 }
 0x14b   : > { %474 = vrot.lane.b32.xlu0 %v467_v45, %s1370_s30 }
 0x14f   : > { %634 = vrot.lane.b32.xlu0 %v632_v46, %s1371_s9 }
 0x153   : > { %742 = vrot.lane.b32.xlu0 %v1032_v47, %s1371_s9 }
 0x1b5   : > { %v471_v49 = vpop.permute.xlu0 %470 }
 0x1b6   : > { %v1611_v50 = vsel %vm479_vm4, 0.0, %v471_v49  ;;  %v1614_v51 = vsel %vm479_vm4, %v471_v49, 0.0 }
 0x1b7   : > { %v511_v52 = vmul.f32 %v509_v48, %v1611_v50  ;;  %v512_v53 = vmul.f32 %v509_v48, %v1614_v51  ;;  %v542_v56 = vmul.f32 %v540_v54, %v1611_v50  ;;  %v543_v57 = vmul.f32 %v540_v54, %v1614_v51 }
 0x1b8   : > { %v594_v11 = vmul.f32 %v591_v63, %v1614_v51  ;;  %v593_v12 = vmul.f32 %v591_v63, %v1611_v50  ;;  %v569_v29 = vmul.f32 %v568_v17, %v1611_v50  ;;  %v677_v38 = vmul.f32 %v676_v23, %v1611_v50 }
 0x1b9   : > { %519 = vrot.lane.b32.xlu1 %v511_v52, %s1372_s12  ;;  %521 = vrot.lane.b32.xlu0 %v512_v53, %s1372_s12  ;;  %v473_v55 = vpop.permute.xlu0 %472  ;;  %v796_v53 = vld [vmem:[#allocation8 + $0x48] sm:$0xff] }
 0x1ba   : > { %v1623_v58 = vsel %vm479_vm4, 0.0, %v473_v55  ;;  %v1626_v59 = vsel %vm479_vm4, %v473_v55, 0.0  ;;  %v608_v24 = vrot.slane %v594_v11, 1  ;;  %v605_v25 = vrot.slane %v593_v12, 1  ;;  %1071 = vmatprep.subr.mxu1 %v796_v53  ;;  %v794_v12 = vld [vmem:[#allocation8 + $0x38] sm:$0xff] }
 0x1bb   : > { %v514_v1 = vmul.f32 %v509_v48, %v1626_v59  ;;  %v513_v3 = vmul.f32 %v509_v48, %v1623_v58  ;;  %v596_v5 = vmul.f32 %v591_v63, %v1626_v59  ;;  %v595_v6 = vmul.f32 %v591_v63, %v1623_v58  ;;  %1072 = vmatpush3.msra.mxu1 %v796_v53 }
 0x1bc   : > { %v545_v15 = vmul.f32 %v540_v54, %v1626_v59  ;;  %v544_v16 = vmul.f32 %v540_v54, %v1623_v58  ;;  %v570_v42 = vmul.f32 %v568_v17, %v1623_v58  ;;  %v678_v46 = vmul.f32 %v676_v23, %v1623_v58  ;;  %v699_v54 = vpop.permute.xlu1 %698 }
 0x1bd   : > { %550 = vrot.lane.b32.xlu1 %v542_v56, %s1373_s15  ;;  %552 = vrot.lane.b32.xlu0 %v543_v57, %s1373_s15  ;;  %v475_v60 = vpop.permute.xlu0 %474  ;;  %v609_v19 = vrot.slane %v596_v5, 1  ;;  %v606_v20 = vrot.slane %v595_v6, 1  ;;  %v576_v49 = vrot.slane %v569_v29, 1  ;;  %v684_v56 = vrot.slane %v677_v38, 2  ;;  %v795_v5 = vld [vmem:[#allocation8 + $0x40] sm:$0xff] }
 0x1be   : > { %v1631_v62 = vsel %vm479_vm4, %v475_v60, 0.0  ;;  %v1634_v0 = vsel %vm479_vm4, 0.0, %v475_v60  ;;  %v577_v52 = vrot.slane %v570_v42, 1  ;;  %v685_v57 = vrot.slane %v678_v46, 2  ;;  %1073 = vmatprep.subr.mxu1 %v795_v5 }
 0x1bf   : > { %v598_v7 = vmul.f32 %v591_v63, %v1631_v62  ;;  %v597_v14 = vmul.f32 %v591_v63, %v1634_v0  ;;  %v610_v31 = vsel %vm575_vm5, %v608_v24, %v609_v19  ;;  %v607_v32 = vsel %vm575_vm5, %v605_v25, %v606_v20  ;;  %1074 = vmatpush3.msra.mxu1 %v795_v5 }
 0x1c0   : > { %v571_v45 = vmul.f32 %v568_v17, %v1634_v0  ;;  %v679_v60 = vmul.f32 %v676_v23, %v1634_v0  ;;  %v704_v61 = vmul.f32 %v699_v54, %v1626_v59  ;;  %v1679_v63 = vsel %vm575_vm5, %v576_v49, %v577_v52  ;;  %1075 = vmatprep.subr.mxu1 %v794_v12  ;;  %v793_v23 = vld [vmem:[#allocation8 + $0x30] sm:$0xff] }
 0x1c1   : > { %525 = vrot.lane.b32.xlu0 %v514_v1, %s1372_s12  ;;  %523 = vrot.lane.b32.xlu1 %v513_v3, %s1372_s12  ;;  %v635_v18 = vpop.permute.xlu0 %634  ;;  %v613_v21 = vrot.slane %v598_v7, 1  ;;  %v611_v26 = vrot.slane %v597_v14, 1  ;;  %v703_v1 = vmul.f32 %v699_v54, %v1623_v58  ;;  %v1686_v4 = vsel %vm683_vm6, %v684_v56, %v685_v57  ;;  %v1031_v56 = vld [vmem:[%s1808_s4] ss:$0 sm:$0xff] }
 0x1c2   : > { %v638_v27 = vmul.f32 %v635_v18, %v1614_v51  ;;  %v1656_v28 = vmul.f32 %v635_v18, %v1626_v59  ;;  %v637_v34 = vmul.f32 %v635_v18, %v1611_v50  ;;  %v639_v35 = vmul.f32 %v635_v18, %v1623_v58  ;;  %1076 = vmatpush3.msra.mxu1 %v794_v12 }
 0x1c3   : > { %v614_v36 = vsel %vm575_vm5, %v609_v19, %v613_v21  ;;  %v612_v39 = vsel %vm575_vm5, %v606_v20, %v611_v26  ;;  %v642_v40 = vmul.f32 %v635_v18, %v1631_v62  ;;  %v641_v41 = vmul.f32 %v635_v18, %v1634_v0  ;;  %1077 = vmatprep.subr.mxu1 %v793_v23 }
 0x1c4   : > { %v652_v43 = vrot.slane %v638_v27, 1  ;;  %v653_v44 = vrot.slane %v1656_v28, 1  ;;  %v649_v47 = vrot.slane %v637_v34, 1  ;;  %v650_v48 = vrot.slane %v639_v35, 1  ;;  %1078 = vmatpush3.msra.mxu1 %v793_v23 }
 0x1c5   : > { %556 = vrot.lane.b32.xlu0 %v545_v15, %s1373_s15  ;;  %554 = vrot.lane.b32.xlu1 %v544_v16, %s1373_s15  ;;  %v579_v55 = vrot.slane %v571_v45, 1  ;;  %v687_v6 = vrot.slane %v679_v60, 2  ;;  %v657_v9 = vrot.slane %v642_v40, 1  ;;  %v655_v10 = vrot.slane %v641_v41, 1  ;;  %v743_v19 = vpop.permute.xlu0 %742 }
 0x1c6   : > { %v654_v7 = vsel %vm575_vm5, %v652_v43, %v653_v44  ;;  %v651_v8 = vsel %vm575_vm5, %v649_v47, %v650_v48  ;;  %v702_v11 = vmul.f32 %v699_v54, %v1614_v51  ;;  %v701_v15 = vmul.f32 %v699_v54, %v1611_v50  ;;  %1079 = vmatprep.subr.mxu1 %v792_v30  ;;  %v790_v43 = vld [vmem:[#allocation8 + $0x18] sm:$0xff] }
 0x1c7   : > { %v1683_v3 = vsel %vm575_vm5, %v577_v52, %v579_v55  ;;  %v1694_v14 = vsel %vm683_vm6, %v685_v57, %v687_v6  ;;  %v706_v16 = vmul.f32 %v699_v54, %v1631_v62  ;;  %v717_v17 = vrot.slane %v704_v61, 2  ;;  %1080 = vmatpush3.msra.mxu1 %v792_v30  ;;  %v787_v52 = vld [vmem:[#allocation8] sm:$0xff] }
 0x1c8   : > { %v705_v18 = vmul.f32 %v699_v54, %v1634_v0  ;;  %v658_v20 = vsel %vm575_vm5, %v653_v44, %v657_v9  ;;  %v656_v21 = vsel %vm575_vm5, %v650_v48, %v655_v10  ;;  %v714_v22 = vrot.slane %v703_v1, 2  ;;  %v789_v44 = vld [vmem:[#allocation8 + $0x10] sm:$0xff] }
 0x1c9   : > { %617 = vrot.lane.b32.xlu0 %v610_v31, %s1372_s12  ;;  %615 = vrot.lane.b32.xlu1 %v607_v32, %s1372_s12  ;;  %v716_v24 = vrot.slane %v702_v11, 2  ;;  %v713_v25 = vrot.slane %v701_v15, 2  ;;  %v721_v27 = vrot.slane %v706_v16, 2  ;;  %v746_v29 = vmul.f32 %v743_v19, %v1614_v51 }
 0x1ca   : > { %v719_v28 = vrot.slane %v705_v18, 2  ;;  %v748_v32 = vmul.f32 %v743_v19, %v1626_v59  ;;  %v745_v34 = vmul.f32 %v743_v19, %v1611_v50  ;;  %v747_v35 = vmul.f32 %v743_v19, %v1623_v58 }
 0x1cb   : > { %v718_v26 = vsel %vm683_vm6, %v716_v24, %v717_v17  ;;  %v715_v31 = vsel %vm683_vm6, %v713_v25, %v714_v22  ;;  %v722_v37 = vsel %vm683_vm6, %v717_v17, %v721_v27  ;;  %v760_v38 = vrot.slane %v746_v29, 2 }
 0x1cc   : > { %v720_v51 = vsel %vm683_vm6, %v714_v22, %v719_v28  ;;  %v761_v59 = vrot.slane %v748_v32, 2  ;;  %v757_v40 = vrot.slane %v745_v34, 2  ;;  %v758_v41 = vrot.slane %v747_v35, 2 }
 0x1cd   : > { %621 = vrot.lane.b32.xlu0 %v614_v36, %s1372_s12  ;;  %619 = vrot.lane.b32.xlu1 %v612_v39, %s1372_s12  ;;  %v791_v36 = vld [vmem:[#allocation8 + $0x20] sm:$0xff]  ;;  %v750_v39 = vmul.f32 %v743_v19, %v1631_v62  ;;  %v749_v42 = vmul.f32 %v743_v19, %v1634_v0  ;;  %v788_v0 = vld [vmem:[#allocation8 + $0x8] sm:$0xff]  ;;  %v497_v53 = vsub.s32 0, %v1580_v2 }
 0x1ce   : > { %1081 = vmatprep.subr.mxu1 %v791_v36  ;;  %v762_v45 = vsel %vm683_vm6, %v760_v38, %v761_v59  ;;  %v759_v46 = vsel %vm683_vm6, %v757_v40, %v758_v41 }
 0x1cf   : > { %1082 = vmatpush3.msra.mxu1 %v791_v36  ;;  %v765_v62 = vrot.slane %v750_v39, 2  ;;  %v763_v47 = vrot.slane %v749_v42, 2  ;;  %v498_v54 = vrot.slane %v1583_v13, %v497_v53  ;;  %v440_v53 = vpop.f32.mrf.mxu0 }
 0x1d0   : > { %1083 = vmatprep.subr.mxu1 %v790_v43 }
 0x1d1   : > { %661 = vrot.lane.b32.xlu0 %v654_v7, %s1373_s15  ;;  %659 = vrot.lane.b32.xlu1 %v651_v8, %s1373_s15  ;;  %v766_v48 = vsel %vm683_vm6, %v761_v59, %v765_v62  ;;  %v764_v49 = vsel %vm683_vm6, %v758_v41, %v763_v47  ;;  %v499_v55 = vmul.f32 %v498_v54, %v1611_v50 }
 0x1d2   : > { %1084 = vmatpush3.msra.mxu1 %v790_v43  ;;  %v500_v13 = vmul.f32 %v498_v54, %v1623_v58 }
 0x1d3   : > { %1085 = vmatprep.subr.mxu1 %v789_v44  ;;  %v501_v1 = vadd.f32 %v1031_v56, %v499_v55  ;;  %v1033_v55 = vld [vmem:[%s1810_s6] ss:$0 sm:$0xff] }
 0x1d4   : > { %1086 = vmatpush3.msra.mxu1 %v789_v44  ;;  %v502_v12 = vadd.f32 %v1031_v56, %v500_v13 }
 0x1d5   : > { %665 = vrot.lane.b32.xlu0 %v658_v20, %s1373_s15  ;;  %663 = vrot.lane.b32.xlu1 %v656_v21, %s1373_s15 }
 0x1d6   : > { %1087 = vmatprep.subr.mxu1 %v788_v0 }
 0x1d7   : > { %1088 = vmatpush3.msra.mxu1 %v788_v0 }
 0x1d8   : > { %1089 = vmatprep.subr.mxu1 %v787_v52 }
 0x1d9   : > { %725 = vrot.lane.b32.xlu0 %v718_v26, %s1372_s12  ;;  %723 = vrot.lane.b32.xlu1 %v715_v31, %s1372_s12 }
 0x1da   : > { %1090 = vmatpush3.msra.mxu1 %v787_v52 }
 0x1dd   : > { %729 = vrot.lane.b32.xlu0 %v722_v37, %s1372_s12  ;;  %727 = vrot.lane.b32.xlu1 %v720_v51, %s1372_s12  ;;  %s1287_s12 = scalar_lea.vmem %s1755_s29, 256 }
 0x1de   : > { %p1288_p12 = scmp.ne.s32.totalorder %s1755_s29, %s1287_s12 }
 0x1e0   : > { %p1289_p5 = pnand %p1288_p12, %p1835_p0 }
 0x1e1   : > { %769 = vrot.lane.b32.xlu0 %v762_v45, %s1373_s15  ;;  %767 = vrot.lane.b32.xlu1 %v759_v46, %s1373_s15 }
 0x1e2   : > { %p1290_p10 = pneg %p1289_p5 }
 0x1e5   : > { %773 = vrot.lane.b32.xlu0 %v766_v48, %s1373_s15  ;;  %771 = vrot.lane.b32.xlu1 %v764_v49, %s1373_s15  ;;  %s1291_s15 = sshll.u32 %s1374_s28, 4  ;;  %s1292_s15 = int_to_ptr.vmem [resolvable:$false] %s1291_s15 }
 0x1e6   : > { %s1293_s14 = scalar_lea.vmem %s1292_s15, 512  ;;  %p1294_p1 = scmp.lt.s32.totalorder %s1755_s29, %s1292_s15 }
 0x1e7   : > { %p1295_p2 = scmp.lt.s32.totalorder %s1293_s14, %s1287_s12 }
 0x1e9   : > { %p1296_p3 = por %p1295_p2, %p1294_p1 }
 0x1eb   : > { %p1297_p9 = pnand %p1296_p3, %p1290_p10 }
 0x22b   : > { %v520_v57 = vpop.permute.xlu1 %519  ;;  %v522_v60 = vpop.permute.xlu0 %521 }
 0x22c   : > { %v528_v61 = vsel %vm527_vm7, %v520_v57, %v522_v60 }
 0x22d   : > { %v532_v5 = vadd.f32 %v528_v61, %v501_v1 }
 0x22f   : > { %v551_v6 = vpop.permute.xlu1 %550  ;;  %v553_v7 = vpop.permute.xlu0 %552 }
 0x230   : > { %v559_v2 = vsel %vm558_vm8, %v551_v6, %v553_v7 }
 0x231   : > { %v563_v8 = vadd.f32 %v559_v2, %v532_v5 }
 0x233   : > { %v524_v50 = vpop.permute.xlu1 %523  ;;  %v526_v9 = vpop.permute.xlu0 %525  ;;  %v583_v10 = vadd.f32 %v1679_v63, %v563_v8 }
 0x234   : > { %v529_v11 = vsel %vm527_vm7, %v524_v50, %v526_v9 }
 0x235   : > { %v533_v15 = vadd.f32 %v529_v11, %v502_v12 }
 0x237   : > { %v555_v16 = vpop.permute.xlu1 %554  ;;  %v557_v17 = vpop.permute.xlu0 %556 }
 0x238   : > { %v560_v18 = vsel %vm558_vm8, %v555_v16, %v557_v17 }
 0x239   : > { %v564_v19 = vadd.f32 %v560_v18, %v533_v15 }
 0x23b   : > { %v616_v20 = vpop.permute.xlu1 %615  ;;  %v618_v21 = vpop.permute.xlu0 %617  ;;  %v584_v22 = vadd.f32 %v1683_v3, %v564_v19 }
 0x23c   : > { %v623_v58 = vsel %vm527_vm7, %v616_v20, %v618_v21 }
 0x23d   : > { %v627_v25 = vadd.f32 %v623_v58, %v583_v10 }
 0x23f   : > { %v620_v23 = vpop.permute.xlu1 %619  ;;  %v622_v24 = vpop.permute.xlu0 %621 }
 0x240   : > { %v624_v27 = vsel %vm527_vm7, %v620_v23, %v622_v24 }
 0x241   : > { %v628_v30 = vadd.f32 %v624_v27, %v584_v22 }
 0x243   : > { %v660_v26 = vpop.permute.xlu1 %659  ;;  %v662_v63 = vpop.permute.xlu0 %661 }
 0x244   : > { %v667_v28 = vsel %vm558_vm8, %v660_v26, %v662_v63 }
 0x245   : > { %v671_v29 = vadd.f32 %v667_v28, %v627_v25 }
 0x247   : > { %v664_v31 = vpop.permute.xlu1 %663  ;;  %v666_v32 = vpop.permute.xlu0 %665  ;;  %v691_v34 = vadd.f32 %v1686_v4, %v671_v29 }
 0x248   : > { %v668_v35 = vsel %vm558_vm8, %v664_v31, %v666_v32 }
 0x249   : > { %v672_v3 = vadd.f32 %v668_v35, %v628_v30 }
 0x24b   : > { %v724_v36 = vpop.permute.xlu1 %723  ;;  %v726_v37 = vpop.permute.xlu0 %725  ;;  %v692_v51 = vadd.f32 %v1694_v14, %v672_v3 }
 0x24c   : > { %v731_v59 = vsel %vm527_vm7, %v724_v36, %v726_v37 }
 0x24d   : > { %v735_v40 = vadd.f32 %v731_v59, %v691_v34 }
 0x24f   : > { %v728_v38 = vpop.permute.xlu1 %727  ;;  %v730_v39 = vpop.permute.xlu0 %729 }
 0x250   : > { %v732_v43 = vsel %vm527_vm7, %v728_v38, %v730_v39 }
 0x251   : > { %v736_v4 = vadd.f32 %v732_v43, %v692_v51 }
 0x253   : > { %v768_v41 = vpop.permute.xlu1 %767  ;;  %v770_v42 = vpop.permute.xlu0 %769 }
 0x254   : > { %v775_v44 = vsel %vm558_vm8, %v768_v41, %v770_v42 }
 0x255   : > { %v779_v45 = vadd.f32 %v775_v44, %v735_v40 }
 0x257   : > { %v772_v46 = vpop.permute.xlu1 %771  ;;  %v774_v62 = vpop.permute.xlu0 %773  ;;  %vm781_vm9 = vcmp.ge.f32.partialorder %v779_v45, 0.0  ;;  %v783_v47 = vmul.f32 0.01, %v779_v45 }
 0x258   : > { %v776_v14 = vsel %vm558_vm8, %v772_v46, %v774_v62 }
 0x259   : > { %v780_v0 = vadd.f32 %v776_v14, %v736_v4  ;;  %v785_v48 = vsel %vm781_vm9, %v779_v45, %v783_v47 }
 0x25a   : > { %1091 = vmatprep.mubr.f32.mxu1 %v785_v48 }
 0x25b   : > { %vm782_vm10 = vcmp.ge.f32.partialorder %v780_v0, 0.0  ;;  %v784_v49 = vmul.f32 0.01, %v780_v0 }
 0x25d   : > { %v786_v52 = vsel %vm782_vm10, %v780_v0, %v784_v49 }
 0x25e   : > { %1092 = vmatmul.mubr.f32.vlgmr.msra.gmra.mxu1 %v786_v52 }
 0x31e   : > { %v1093_v54 = vpop.f32.mrf.mxu1 }
 0x31f   : > { %v879_v56 = vadd.f32 %v1093_v54, %v440_v53 }
 0x320   : > { %v869_v57 = vpop.f32.mrf.mxu1 }
 0x321   : > { %v888_v60 = vadd.f32 %v1033_v55, %v879_v56  ;;  %v878_v61 = vadd.f32 %v869_v57, %v1601_v33 }
 0x323   : > { %vm890_vm11 = vcmp.ge.f32.partialorder %v888_v60, 0.0  ;;  %v892_v1 = vmul.f32 0.01, %v888_v60  ;;  %v887_v5 = vadd.f32 %v1033_v55, %v878_v61 }
 0x325   : > { %v894_v6 = vsel %vm890_vm11, %v888_v60, %v892_v1  ;;  %vm889_vm12 = vcmp.ge.f32.partialorder %v887_v5, 0.0  ;;  %v891_v7 = vmul.f32 0.01, %v887_v5 }
 0x326   : > { %896 = vst [vmem:[%s340_s10 + $0x8] sm:$0xff] %v894_v6 }
 0x327   : > { %v893_v33 = vsel %vm889_vm12, %v887_v5, %v891_v7 }
 0x328   : > { %895 = vst [vmem:[%s340_s10] sm:$0xff] %v893_v33 }
 0x329   : > { %1300 = shalt.err (!%p1297_p9)
}
 0x32a   : > { %s1301_s20 = scalar_lea.hbm %s1760_s16, 256  ;;  %s1305_s10 = scalar_lea.hbm %s1811_s7, 512 }
 0x32b   : > { %p1302_p7 = scmp.ne.s32.totalorder %s1760_s16, %s1301_s20  ;;  %p1306_p6 = scmp.lt.s32.totalorder %s1760_s16, %s1811_s7 }
 0x32c   : > { %p1307_p11 = scmp.lt.s32.totalorder %s1305_s10, %s1301_s20 }
 0x32d   : > { %p1303_p4 = pnand %p1302_p7, %p1835_p0 }
 0x32e   : > { %p1308_p13 = por %p1307_p11, %p1306_p6 }
 0x32f   : > { %p1304_p8 = pneg %p1303_p4 }
 0x331   : > { %p1309_p12 = pnand %p1308_p13, %p1304_p8 }
 0x333   : > { %1312 = shalt.err (!%p1309_p12)
}
 0x334   : > { %s1375_s11 = smov 128  }
 0x335   : > { %1108 = dma.vmem_to_hbm [thread:$0]  (%p1835_p0), %s1755_s29, 256, %s1760_s16, %s898_s1, %s1375_s11, %s1375_s11, %s1370_s30  }
 0x336 PF: > { %s926_s12 = sand.u32 1, %s1347_s24   ;;  %p1836_p5 = scmp.ne.s32.totalorder %s1820_s8, 0 }
 0x337   : > { %p1837_p10 = scmp.ge.s32.totalorder %s1359_s27, 2  ;;  %s927_s28 = scalar_lea.sflag [#allocation4], %s926_s12 }
 0x339   : > { %p1125_p1 = pnand %p1837_p10, %p1836_p5 }
 0x33b   : > { %p1126_p2 = pneg %p1125_p1 }
 0x33d   : > { %1342 = dma.done.wait (%p1126_p2), %s927_s28, 256  }
 0x33e   : > { %1344 = vsyncadd (%p1126_p2), %s927_s28, 4294967040  ;;  %p22_p3 = scmp.ge.s32.totalorder %s1491_s13, 4   ;;  %s1838_s24 = smov %s1351_s25 }
 0x33f   : > { %s1839_s25 = smov %s1355_s26  ;;  %s1840_s26 = smov %s1512_s18 }
 0x340   : > { %s1841_s27 = smov %s1491_s13  ;;  %24 = sbr.rel (!%p22_p3) target bundleno = 9 (0x9), region = 105 }
 0x345   :  { %932 = vsyncpa [#allocation3], 1 }
 0x346   :  { %934 = vsyncpa [#allocation3 + $0x1], 1 }
 0x347   :  { %935 = vsyncpa [#allocation6], 1 }
 0x348   :  { %936 = vsyncpa [#allocation9], 1 }
 0x349   :  { %937 = vsyncpa [#allocation4], 1 }
 0x34a   :  { %939 = vsyncpa [#allocation4 + $0x1], 1 }

</bundles_post_ra>
